<compile_context>
chip_gen: v6e
topology: v6e:2x2x1
jax: 0.10.0
libtpu: 0.0.40
codegen_flags: <defaults>
</compile_context>

<pallas_src>
import functools

import numpy as np
import jax
import jax.numpy as jnp
from jax.experimental import pallas as pl
from jax.experimental.pallas import tpu as pltpu


def _round_up(x, m):
    return ((x + m - 1) // m) * m


def _relu_layernorm_store(y, gamma, beta, out_ref, d_out_true):
    """ReLU -> LayerNorm over the TRUE feature width -> affine -> store."""
    y = jnp.maximum(y, 0.0)
    lane = jax.lax.broadcasted_iota(jnp.int32, y.shape, 1)
    fmask = (lane < d_out_true).astype(jnp.float32)
    y = y * fmask                                   # keep padded lanes out of stats
    inv_d = 1.0 / float(d_out_true)
    mu = jnp.sum(y, axis=-1, keepdims=True) * inv_d
    centered = (y - mu) * fmask
    var = jnp.sum(centered * centered, axis=-1, keepdims=True) * inv_d
    ynorm = centered * jax.lax.rsqrt(var + 1e-5)
    # TODO(synk): nn.Dropout omitted (identity / eval semantics) — PyTorch
    # training RNG not reproducible here.
    out_ref[...] = (ynorm * gamma + beta).astype(out_ref.dtype)


def _gsage_packed_kernel(mask_ref, m_ref, h_all_ref, hx_ref, inv_deg_ref,
                         w_ref, b_ref, gamma_ref, beta_ref, out_ref, agg_acc,
                         *, d_in_true, d_out_true):
    """Packed path: 2*d_in <= d_in_pad, self feats pre-shifted to lanes [d_in:2*d_in]."""
    i = pl.program_id(0)
    k = pl.program_id(1)
    nk = pl.num_programs(1)

    @pl.when(k == 0)
    def _():
        # Self features already occupy the lanes the agg sum never touches.
        agg_acc[...] = hx_ref[...].astype(jnp.float32)

    @pl.when(mask_ref[i * nk + k] != 0)          # skip all-zero M tiles
    def _():
        agg_acc[...] += jnp.dot(m_ref[...], h_all_ref[...],
                                preferred_element_type=jnp.float32)

    @pl.when(k == nk - 1)
    def _():
        a = agg_acc[...]
        lane = jax.lax.broadcasted_iota(jnp.int32, a.shape, 1)
        # f32 1/deg rescale applied only to the agg lanes; self lanes untouched.
        scale = jnp.where(lane < d_in_true, inv_deg_ref[...], 1.0)
        x = (a * scale).astype(jnp.bfloat16)
        y = jnp.dot(x, w_ref[...], preferred_element_type=jnp.float32) + b_ref[...]
        _relu_layernorm_store(y, gamma_ref[...], beta_ref[...], out_ref, d_out_true)


def _gsage_split_kernel(mask_ref, m_ref, h_all_ref, hx_ref, inv_deg_ref,
                        w_agg_ref, w_self_ref, b_ref, gamma_ref, beta_ref,
                        out_ref, agg_acc, y_acc, *, d_out_true):
    """Split path: two K=d_in_pad dots, self half computed at k==0."""
    i = pl.program_id(0)
    k = pl.program_id(1)
    nk = pl.num_programs(1)

    @pl.when(k == 0)
    def _():
        agg_acc[...] = jnp.zeros_like(agg_acc)
        y_acc[...] = jnp.dot(hx_ref[...], w_self_ref[...],
                             preferred_element_type=jnp.float32)

    @pl.when(mask_ref[i * nk + k] != 0)          # skip all-zero M tiles
    def _():
        agg_acc[...] += jnp.dot(m_ref[...], h_all_ref[...],
                                preferred_element_type=jnp.float32)

    @pl.when(k == nk - 1)
    def _():
        agg = (agg_acc[...] * inv_deg_ref[...]).astype(jnp.bfloat16)
        y = (y_acc[...]
             + jnp.dot(agg, w_agg_ref[...], preferred_element_type=jnp.float32)
             + b_ref[...])
        _relu_layernorm_store(y, gamma_ref[...], beta_ref[...], out_ref, d_out_true)


def gsage_layer(m_np, inv_deg_np, h_all, h_batch, params, d_in, *, tn, tb_max=256):
    """One fused GraphSAGE layer, tiled over (batch, node) blocks.

    m_np:      (B, N) numpy 0/1 indicator (row-normalization applied via inv_deg).
    inv_deg_np:(B,)   numpy f32, 1/|neigh| (0 when no neighbors).
    h_all:     (N_pad, d_in_pad) bf16 device table (previous layer, padded).
    h_batch:   (B, d_in_pad)     bf16 device rows of the batch nodes.
    Returns (B_pad, d_out_pad) bf16 (caller slices).
    """
    B, N = m_np.shape
    N_pad, d_in_pad = h_all.shape
    assert N_pad % tn == 0
    d_out = params['d_out']
    d_out_pad = params['b'].shape[1]
    packed = params['mode'] == 'packed'

    # ---- B tiling: lane/sublane friendly; >= 2 tiles on the parallel axis when
    # possible so both v7x TensorCores get work.  (Demo B_pad=16 -> 1 tile.)
    B_pad = _round_up(B, 16)
    tb = min(tb_max, B_pad)
    if B_pad >= 32 and B_pad // tb < 2:
        tb = _round_up(B_pad // 2, 16)
    B_pad = _round_up(B_pad, tb)

    n_bt, n_kt = B_pad // tb, N_pad // tn

    # ---- Host-side dense aggregation operands.
    # TODO(synk): for degree-k graphs M is ~k/N dense — replace this dense bf16 M
    # + block mask with scalar-prefetched neighbor offsets / gather DMA of only
    # the needed H_all rows (largest remaining win for big graphs).
    m_pad = np.zeros((B_pad, N_pad), np.float32)
    m_pad[:B, :N] = m_np
    blk_mask = jnp.asarray(
        m_pad.reshape(n_bt, tb, n_kt, tn).any(axis=(1, 3)).astype(np.int32).reshape(-1))
    m_dev = jnp.asarray(m_pad, dtype=jnp.bfloat16)          # 0/1 exact in bf16

    inv_deg = np.zeros((B_pad, 1), np.float32)
    inv_deg[:B, 0] = inv_deg_np
    inv_deg = jnp.asarray(inv_deg)

    if packed:
        # Self features shifted into lanes [d_in : 2*d_in] of the agg block.
        hx = jnp.zeros((B_pad, d_in_pad), jnp.bfloat16)
        hx = hx.at[:B, d_in:2 * d_in].set(h_batch[:, :d_in])
    else:
        hx = jnp.zeros((B_pad, d_in_pad), jnp.bfloat16).at[:B, :].set(h_batch)

    # ---- Cost / VMEM accounting.
    proj_passes = 1 if packed else 2
    flops = 2 * B_pad * N_pad * d_in_pad + proj_passes * 2 * B_pad * d_in_pad * d_out_pad
    bytes_accessed = (m_dev.size * 2
                      + n_bt * h_all.size * 2          # H_all re-streamed per B tile
                      + hx.size * 2 + inv_deg.size * 4
                      + proj_passes * d_in_pad * d_out_pad * 2
                      + 3 * d_out_pad * 4
                      + B_pad * d_out_pad * 2)
    vmem_need = (2 * (tb * tn + tn * d_in_pad + tb * d_in_pad) * 2   # M, H_all, hx (x2 buf, bf16)
                 + 2 * tb * 4                                         # inv_deg
                 + proj_passes * d_in_pad * d_out_pad * 2             # W(s), single-buffered
                 + 3 * 2 * d_out_pad * 4                              # b/gamma/beta
                 + 2 * tb * d_out_pad * 2                             # out (x2 buf, bf16)
                 + tb * d_in_pad * 4 + (0 if packed else tb * d_out_pad * 4))
    vmem_limit = int(min(100 * 2**20, max(32 * 2**20, 2 * vmem_need)))

    def _run(use_single_buffer):
        const_kw = {'pipeline_mode': pl.Buffered(1)} if use_single_buffer else {}
        cmap = lambda i, k, msk: (0, 0)

        in_specs = [
            pl.BlockSpec((tb, tn), lambda i, k, msk: (i, k)),              # M
            pl.BlockSpec((tn, d_in_pad), lambda i, k, msk: (k, 0)),        # H_all
            pl.BlockSpec((tb, d_in_pad), lambda i, k, msk: (i, 0)),        # hx (self)
            pl.BlockSpec((tb, 1), lambda i, k, msk: (i, 0)),               # inv_deg
            pl.BlockSpec((d_in_pad, d_out_pad), cmap, **const_kw),         # W (agg/packed)
        ]
        operands = [blk_mask, m_dev, h_all, hx, inv_deg, params['w']]
        if packed:
            kernel = functools.partial(_gsage_packed_kernel,
                                       d_in_true=d_in, d_out_true=d_out)
            scratch = [pltpu.VMEM((tb, d_in_pad), jnp.float32)]
        else:
            in_specs.append(pl.BlockSpec((d_in_pad, d_out_pad), cmap, **const_kw))  # W_self
            operands.append(params['w_self'])
            kernel = functools.partial(_gsage_split_kernel, d_out_true=d_out)
            scratch = [pltpu.VMEM((tb, d_in_pad), jnp.float32),
                       pltpu.VMEM((tb, d_out_pad), jnp.float32)]
        in_specs += [pl.BlockSpec((1, d_out_pad), cmap, **const_kw),       # b
                     pl.BlockSpec((1, d_out_pad), cmap, **const_kw),       # gamma
                     pl.BlockSpec((1, d_out_pad), cmap, **const_kw)]       # beta
        operands += [params['b'], params['gamma'], params['beta']]

        return pl.pallas_call(
            kernel,
            out_shape=jax.ShapeDtypeStruct((B_pad, d_out_pad), jnp.bfloat16),
            grid_spec=pltpu.PrefetchScalarGridSpec(
                num_scalar_prefetch=1,
                grid=(n_bt, n_kt),
                in_specs=in_specs,
                out_specs=pl.BlockSpec((tb, d_out_pad), lambda i, k, msk: (i, 0)),
                scratch_shapes=scratch),
            compiler_params=pltpu.CompilerParams(
                dimension_semantics=("parallel", "arbitrary"),
                vmem_limit_bytes=vmem_limit),
            cost_estimate=pl.CostEstimate(
                flops=int(flops),
                transcendentals=int(B_pad),
                bytes_accessed=int(bytes_accessed)),
        )(*operands)

    try:
        return _run(True)
    except Exception:
        # pl.Buffered(1) unsupported on this jax/backend combo — fall back to
        # default double-buffering (correctness identical).
        return _run(False)


class GSageUnsupPallas:
    """JAX/Pallas port of GSageUnsup. Graph sampling/BFS is host-side glue."""

    def __init__(self, graph, nodes_feat, depth, dim_feature, dim_hidden,
                 dropout, key, sample_size=(5, 7, 10, 10, 10, 10, 10),
                 tn_max=1024):
        self.adj = np.asarray(graph)
        self.nodes = len(graph)
        self.depth = min(7, depth)
        self.sample_size = list(sample_size)
        self.dims = [dim_feature] + list(dim_hidden)

        # N tiling fixed per graph: hidden tables are stored row-padded to n_pad.
        self.tn = min(tn_max, _round_up(self.nodes, 128))
        self.n_pad = _round_up(self.nodes, self.tn)

        # ---- Parameters (shapes mirror nn.Linear / nn.LayerNorm), pre-padded
        # lane-dense and stored bf16 (weights) / f32 (bias & norm).
        self.params = []
        for layer in range(1, self.depth + 1):
            d_in, d_out = self.dims[layer - 1], self.dims[layer]
            d_in_pad, d_out_pad = _round_up(d_in, 128), _round_up(d_out, 128)
            key, k1, k2 = jax.random.split(key, 3)
            bound = 1.0 / np.sqrt(2 * d_in)
            w = jax.random.uniform(k1, (2 * d_in, d_out), jnp.float32, -bound, bound)
            b = jax.random.uniform(k2, (1, d_out), jnp.float32, -bound, bound)
            packed = (2 * d_in) <= d_in_pad
            if packed:
                # agg rows [0:d_in], self rows [d_in:2*d_in] share one 128-lane K block.
                w_p = jnp.zeros((d_in_pad, d_out_pad), jnp.float32)
                w_p = w_p.at[:2 * d_in, :d_out].set(w)
                w_dev, w_self = w_p.astype(jnp.bfloat16), None
            else:
                w_a = jnp.zeros((d_in_pad, d_out_pad), jnp.float32).at[:d_in, :d_out].set(w[:d_in])
                w_s = jnp.zeros((d_in_pad, d_out_pad), jnp.float32).at[:d_in, :d_out].set(w[d_in:])
                w_dev, w_self = w_a.astype(jnp.bfloat16), w_s.astype(jnp.bfloat16)
            self.params.append(dict(
                mode='packed' if packed else 'split',
                w=w_dev, w_self=w_self,
                b=jnp.zeros((1, d_out_pad), jnp.float32).at[:, :d_out].set(b),
                gamma=jnp.zeros((1, d_out_pad), jnp.float32).at[:, :d_out].set(1.0),
                beta=jnp.zeros((1, d_out_pad), jnp.float32),
                d_out=d_out))

        # ---- Hidden-state tables: stored padded (n_pad rows, 128-multiple lanes)
        # in bf16 so the kernel consumes them with no per-forward pad/cast pass.
        feat = jnp.asarray(nodes_feat, jnp.float32)
        d0_pad = _round_up(self.dims[0], 128)
        t0 = jnp.zeros((self.n_pad, d0_pad), jnp.bfloat16)
        t0 = t0.at[:self.nodes, :self.dims[0]].set(feat.astype(jnp.bfloat16))
        self.hidden = {'layer 0': t0}
        for layer in range(1, self.depth + 1):
            d = self.dims[layer]
            d_pad = _round_up(d, 128)
            key, kh = jax.random.split(key)
            init = jax.random.uniform(kh, (self.nodes, d), jnp.float32)
            t = jnp.zeros((self.n_pad, d_pad), jnp.bfloat16)
            t = t.at[:self.nodes, :d].set(init.astype(jnp.bfloat16))
            self.hidden['layer %d' % layer] = t

        # Precompute hop-k neighbor sets (mirrors NeighSampler.bfs_).
        self.neighbor_map = {}
        for k in range(1, self.depth + 1):
            self.neighbor_map['depth %d' % k] = {
                n: self._bfs({n}, k) for n in range(self.nodes)}

    def _bfs(self, nodes, hops):
        hops -= 1
        while hops >= 0:
            trg = set()
            for node in nodes:
                trg |= set(np.where(self.adj[:, node] == 1)[0].tolist())
            nodes = trg
            hops -= 1
        return nodes

    def _agg_arrays(self, node_batch, hop, sample_size):
        """Dense 0/1 [B, N] indicator + f32 1/deg vector (== unsorted_segment_mean)."""
        B = len(node_batch)
        m = np.zeros((B, self.nodes), dtype=np.float32)
        inv_deg = np.zeros((B,), dtype=np.float32)
        for i, node in enumerate(node_batch):
            neigh = sorted(self.neighbor_map['depth %d' % hop][node])
            # TODO(synk): random neighbor sub-sampling (len > sample_size) skipped;
            # demo graph keeps |neigh| <= sample_size.
            if len(neigh) > 0:
                m[i, neigh] = 1.0
                inv_deg[i] = 1.0 / len(neigh)
        return m, inv_deg

    def forward(self, node_batch):
        node_batch = np.asarray(node_batch)
        nb_dev = jnp.asarray(node_batch)
        B = len(node_batch)
        new_tables = dict(self.hidden)
        hidden_at_k = None
        for layer in range(1, self.depth + 1):
            layer_cur = 'layer %d' % layer
            layer_pre = 'layer %d' % (layer - 1)
            d_in = self.dims[layer - 1]
            hop = self.depth - (layer - 1)
            m_np, inv_deg_np = self._agg_arrays(node_batch, hop, self.sample_size[-layer])
            h_all = self.hidden[layer_pre]            # old table (matches torch semantics)
            h_batch = h_all[nb_dev, :]
            p = self.params[layer - 1]
            out_pad = gsage_layer(m_np, inv_deg_np, h_all, h_batch, p, d_in, tn=self.tn)
            # TODO(synk): replace this full-table XLA scatter with
            # input_output_aliases + an in-kernel row scatter of the B rows.
            new_tables[layer_cur] = new_tables[layer_cur].at[nb_dev, :].set(out_pad[:B])
            hidden_at_k = out_pad[:B, :p['d_out']].astype(jnp.float32)
        self.hidden = new_tables
        last = 'layer %d' % self.depth
        hidden_last = self.hidden[last][:self.nodes, :self.dims[self.depth]].astype(jnp.float32)
        # PyTorch returns (hidden_at_k, self.hidden[last dict key]).
        return hidden_at_k, hidden_last


if __name__ == "__main__":
    key = jax.random.PRNGKey(0)

    N = 16                  # nodes in the graph
    depth = 2
    dim_feature = 32
    dim_hidden = [96, 32]   # layer 1 hits the packed path, layer 2 the split path

    # Symmetric ring graph (degree 2) -> hop-k neighbor sets stay <= sample_size.
    adj = np.zeros((N, N), dtype=np.int32)
    for i in range(N):
        adj[i, (i + 1) % N] = 1
        adj[(i + 1) % N, i] = 1

    key, kf = jax.random.split(key)
    feats = jax.random.normal(kf, (N, dim_feature), dtype=jnp.float32)

    model = GSageUnsupPallas(adj.tolist(), feats, depth, dim_feature, dim_hidden,
                             dropout=0.1, key=key)

    node_batch = list(range(8))   # batch of 8 node ids
    h_k, hidden_last = model.forward(node_batch)
    jax.block_until_ready((h_k, hidden_last))

    assert h_k.shape == (8, dim_hidden[-1])
    assert hidden_last.shape == (N, dim_hidden[-1])
    assert bool(jnp.all(jnp.isfinite(h_k)))
    assert bool(jnp.all(jnp.isfinite(hidden_last)))
    print("KERNEL_OK")
</pallas_src>

<mosaic_0001>
module attributes {stable_mosaic.version = 11 : i64} {
  func.func @_gsage_packed_kernel(%arg0: i32, %arg1: i32, %arg2: memref<1xi32, #tpu.memory_space<smem>>, %arg3: memref<16x128xbf16, #tpu.memory_space<vmem>>, %arg4: memref<128x128xbf16, #tpu.memory_space<vmem>>, %arg5: memref<16x128xbf16, #tpu.memory_space<vmem>>, %arg6: memref<16x1xf32, #tpu.memory_space<vmem>>, %arg7: memref<128x128xbf16, #tpu.memory_space<vmem>>, %arg8: memref<1x128xf32, #tpu.memory_space<vmem>>, %arg9: memref<1x128xf32, #tpu.memory_space<vmem>>, %arg10: memref<1x128xf32, #tpu.memory_space<vmem>>, %arg11: memref<16x128xbf16, #tpu.memory_space<vmem>>, %arg12: memref<16x128xf32, #tpu.memory_space<vmem>>) attributes {dimension_semantics = [#tpu.dimension_semantics<parallel>, #tpu.dimension_semantics<arbitrary>], iteration_bounds = array<i64: 1, 1>, scalar_prefetch = 1 : i64, scratch_operands = 1 : i64, tpu.core_type = #tpu.core_type<tc>, window_params = [{transform_indices = @transform_0, window_bounds = array<i64: 16, 128>}, {transform_indices = @transform_1, window_bounds = array<i64: 128, 128>}, {transform_indices = @transform_2, window_bounds = array<i64: 16, 128>}, {transform_indices = @transform_3, window_bounds = array<i64: 16, 1>}, {pipeline_mode = #tpu.pipeline_mode<synchronous>, transform_indices = @transform_4, window_bounds = array<i64: 128, 128>}, {pipeline_mode = #tpu.pipeline_mode<synchronous>, transform_indices = @transform_5, window_bounds = array<i64: 1, 128>}, {pipeline_mode = #tpu.pipeline_mode<synchronous>, transform_indices = @transform_6, window_bounds = array<i64: 1, 128>}, {pipeline_mode = #tpu.pipeline_mode<synchronous>, transform_indices = @transform_7, window_bounds = array<i64: 1, 128>}, {transform_indices = @transform_8, window_bounds = array<i64: 16, 128>}]} {
    %c0_i32 = arith.constant 0 : i32
    %0 = arith.cmpi eq, %arg1, %c0_i32 : i32
    %1 = arith.extui %0 : i1 to i32
    %c0_i32_0 = arith.constant 0 : i32
    %2 = arith.cmpi ne, %1, %c0_i32_0 : i32
    scf.if %2 {
      %c0 = arith.constant 0 : index
      %c0_5 = arith.constant 0 : index
      %13 = vector.load %arg5[%c0, %c0_5] : memref<16x128xbf16, #tpu.memory_space<vmem>>, vector<16x128xbf16>
      %14 = arith.extf %13 : vector<16x128xbf16> to vector<16x128xf32>
      %c0_6 = arith.constant 0 : index
      %c0_7 = arith.constant 0 : index
      %15 = vector.load %arg12[%c0_6, %c0_7] : memref<16x128xf32, #tpu.memory_space<vmem>>, vector<16x128xf32>
      tpu.vector_store %arg12[%c0_6, %c0_7], %14 {strides = array<i32>} : memref<16x128xf32, #tpu.memory_space<vmem>>, vector<16x128xf32>,
    } else {
    }
    %c1_i32 = arith.constant 1 : i32
    %3 = arith.muli %arg0, %c1_i32 : i32
    %4 = arith.addi %3, %arg1 : i32
    %5 = arith.index_cast %4 : i32 to index
    %6 = memref.load %arg2[%5] : memref<1xi32, #tpu.memory_space<smem>>
    %c0_i32_1 = arith.constant 0 : i32
    %7 = arith.cmpi ne, %6, %c0_i32_1 : i32
    %8 = arith.extui %7 : i1 to i32
    %c0_i32_2 = arith.constant 0 : i32
    %9 = arith.cmpi ne, %8, %c0_i32_2 : i32
    scf.if %9 {
      %c0 = arith.constant 0 : index
      %c0_5 = arith.constant 0 : index
      %13 = vector.load %arg12[%c0, %c0_5] : memref<16x128xf32, #tpu.memory_space<vmem>>, vector<16x128xf32>
      %c0_6 = arith.constant 0 : index
      %c0_7 = arith.constant 0 : index
      %14 = vector.load %arg3[%c0_6, %c0_7] : memref<16x128xbf16, #tpu.memory_space<vmem>>, vector<16x128xbf16>
      %c0_8 = arith.constant 0 : index
      %c0_9 = arith.constant 0 : index
      %15 = vector.load %arg4[%c0_8, %c0_9] : memref<128x128xbf16, #tpu.memory_space<vmem>>, vector<128x128xbf16>
      %cst = arith.constant dense<0.000000e+00> : vector<16x128xf32>
      %16 = tpu.matmul %14, %15, %cst {dimension_numbers = #tpu.dot_dimension_numbers<[1], [0], [0], [1], [0, 0, 1, 1], [], []>} : vector<16x128xbf16>, vector<128x128xbf16>, vector<16x128xf32> -> vector<16x128xf32>
      %17 = arith.addf %13, %16 : vector<16x128xf32>
      %c0_10 = arith.constant 0 : index
      %c0_11 = arith.constant 0 : index
      %18 = vector.load %arg12[%c0_10, %c0_11] : memref<16x128xf32, #tpu.memory_space<vmem>>, vector<16x128xf32>
      tpu.vector_store %arg12[%c0_10, %c0_11], %17 {strides = array<i32>} : memref<16x128xf32, #tpu.memory_space<vmem>>, vector<16x128xf32>,
    } else {
    }
    %c0_i32_3 = arith.constant 0 : i32
    %10 = arith.cmpi eq, %arg1, %c0_i32_3 : i32
    %11 = arith.extui %10 : i1 to i32
    %c0_i32_4 = arith.constant 0 : i32
    %12 = arith.cmpi ne, %11, %c0_i32_4 : i32
    scf.if %12 {
      %c0 = arith.constant 0 : index
      %c0_5 = arith.constant 0 : index
      %13 = vector.load %arg12[%c0, %c0_5] : memref<16x128xf32, #tpu.memory_space<vmem>>, vector<16x128xf32>
      %14 = tpu.iota {dimensions = array<i32: 1>} : vector<16x128xi32>
      %c32_i32 = arith.constant 32 : i32
      %15 = vector.broadcast %c32_i32 : i32 to vector<16x128xi32>
      %16 = arith.cmpi slt, %14, %15 : vector<16x128xi32>
      %c0_6 = arith.constant 0 : index
      %c0_7 = arith.constant 0 : index
      %17 = vector.load %arg6[%c0_6, %c0_7] : memref<16x1xf32, #tpu.memory_space<vmem>>, vector<16x1xf32>
      %cst = arith.constant 1.000000e+00 : f32
      %18 = vector.shape_cast %17 : vector<16x1xf32> to vector<16x1xf32>
      %19 = vector.broadcast %18 : vector<16x1xf32> to vector<16x128xf32>
      %20 = vector.broadcast %cst : f32 to vector<16x128xf32>
      %21 = arith.select %16, %19, %20 : vector<16x128xi1>, vector<16x128xf32>
      %22 = arith.mulf %13, %21 : vector<16x128xf32>
      %23 = arith.truncf %22 : vector<16x128xf32> to vector<16x128xbf16>
      %c0_8 = arith.constant 0 : index
      %c0_9 = arith.constant 0 : index
      %24 = vector.load %arg7[%c0_8, %c0_9] : memref<128x128xbf16, #tpu.memory_space<vmem>>, vector<128x128xbf16>
      %cst_10 = arith.constant dense<0.000000e+00> : vector<16x128xf32>
      %25 = tpu.matmul %23, %24, %cst_10 {dimension_numbers = #tpu.dot_dimension_numbers<[1], [0], [0], [1], [0, 0, 1, 1], [], []>} : vector<16x128xbf16>, vector<128x128xbf16>, vector<16x128xf32> -> vector<16x128xf32>
      %c0_11 = arith.constant 0 : index
      %c0_12 = arith.constant 0 : index
      %26 = vector.load %arg8[%c0_11, %c0_12] : memref<1x128xf32, #tpu.memory_space<vmem>>, vector<1x128xf32>
      %27 = vector.broadcast %26 : vector<1x128xf32> to vector<16x128xf32>
      %28 = arith.addf %25, %27 : vector<16x128xf32>
      %c0_13 = arith.constant 0 : index
      %c0_14 = arith.constant 0 : index
      %29 = vector.load %arg9[%c0_13, %c0_14] : memref<1x128xf32, #tpu.memory_space<vmem>>, vector<1x128xf32>
      %c0_15 = arith.constant 0 : index
      %c0_16 = arith.constant 0 : index
      %30 = vector.load %arg10[%c0_15, %c0_16] : memref<1x128xf32, #tpu.memory_space<vmem>>, vector<1x128xf32>
      %cst_17 = arith.constant 0.000000e+00 : f32
      %31 = vector.broadcast %cst_17 : f32 to vector<16x128xf32>
      %32 = arith.maximumf %28, %31 : vector<16x128xf32>
      %33 = tpu.iota {dimensions = array<i32: 1>} : vector<16x128xi32>
      %c96_i32 = arith.constant 96 : i32
      %34 = vector.broadcast %c96_i32 : i32 to vector<16x128xi32>
      %35 = arith.cmpi slt, %33, %34 : vector<16x128xi32>
      %36 = arith.extui %35 : vector<16x128xi1> to vector<16x128xi32>
      %37 = arith.sitofp %36 : vector<16x128xi32> to vector<16x128xf32>
      %38 = arith.mulf %32, %37 : vector<16x128xf32>
      %cst_18 = arith.constant dense<0.000000e+00> : vector<16xf32>
      %39 = vector.multi_reduction <add>, %38, %cst_18 [1] : vector<16x128xf32> to vector<16xf32>
      %40 = vector.shape_cast %39 : vector<16xf32> to vector<16x1xf32>
      %cst_19 = arith.constant 0.010416667 : f32
      %41 = vector.broadcast %cst_19 : f32 to vector<16x1xf32>
      %42 = arith.mulf %40, %41 : vector<16x1xf32>
      %43 = vector.broadcast %42 : vector<16x1xf32> to vector<16x128xf32>
      %44 = arith.subf %38, %43 : vector<16x128xf32>
      %45 = arith.mulf %44, %37 : vector<16x128xf32>
      %46 = arith.mulf %45, %45 : vector<16x128xf32>
      %cst_20 = arith.constant dense<0.000000e+00> : vector<16xf32>
      %47 = vector.multi_reduction <add>, %46, %cst_20 [1] : vector<16x128xf32> to vector<16xf32>
      %48 = vector.shape_cast %47 : vector<16xf32> to vector<16x1xf32>
      %cst_21 = arith.constant 0.010416667 : f32
      %49 = vector.broadcast %cst_21 : f32 to vector<16x1xf32>
      %50 = arith.mulf %48, %49 : vector<16x1xf32>
      %cst_22 = arith.constant 9.99999974E-6 : f32
      %51 = vector.broadcast %cst_22 : f32 to vector<16x1xf32>
      %52 = arith.addf %50, %51 : vector<16x1xf32>
      %53 = math.rsqrt %52 : vector<16x1xf32>
      %54 = vector.broadcast %53 : vector<16x1xf32> to vector<16x128xf32>
      %55 = arith.mulf %45, %54 : vector<16x128xf32>
      %56 = vector.broadcast %29 : vector<1x128xf32> to vector<16x128xf32>
      %57 = arith.mulf %55, %56 : vector<16x128xf32>
      %58 = vector.broadcast %30 : vector<1x128xf32> to vector<16x128xf32>
      %59 = arith.addf %57, %58 : vector<16x128xf32>
      %60 = arith.truncf %59 : vector<16x128xf32> to vector<16x128xbf16>
      %c0_23 = arith.constant 0 : index
      %c0_24 = arith.constant 0 : index
      %61 = vector.load %arg11[%c0_23, %c0_24] : memref<16x128xbf16, #tpu.memory_space<vmem>>, vector<16x128xbf16>
      tpu.vector_store %arg11[%c0_23, %c0_24], %60 {strides = array<i32>} : memref<16x128xbf16, #tpu.memory_space<vmem>>, vector<16x128xbf16>,
    } else {
    }
    return
  }
  func.func @transform_0(%arg0: i32, %arg1: i32, %arg2: memref<1xi32, #tpu.memory_space<smem>>) -> (i32, i32) {
    %c0_i32 = arith.constant 0 : i32
    return %arg0, %arg1 : i32, i32
  }
  func.func @transform_1(%arg0: i32, %arg1: i32, %arg2: memref<1xi32, #tpu.memory_space<smem>>) -> (i32, i32) {
    %c0_i32 = arith.constant 0 : i32
    %c0_i32_0 = arith.constant 0 : i32
    return %arg1, %c0_i32 : i32, i32
  }
  func.func @transform_2(%arg0: i32, %arg1: i32, %arg2: memref<1xi32, #tpu.memory_space<smem>>) -> (i32, i32) {
    %c0_i32 = arith.constant 0 : i32
    %c0_i32_0 = arith.constant 0 : i32
    return %arg0, %c0_i32 : i32, i32
  }
  func.func @transform_3(%arg0: i32, %arg1: i32, %arg2: memref<1xi32, #tpu.memory_space<smem>>) -> (i32, i32) {
    %c0_i32 = arith.constant 0 : i32
    %c0_i32_0 = arith.constant 0 : i32
    return %arg0, %c0_i32 : i32, i32
  }
  func.func @transform_4(%arg0: i32, %arg1: i32, %arg2: memref<1xi32, #tpu.memory_space<smem>>) -> (i32, i32) {
    %c0_i32 = arith.constant 0 : i32
    %c0_i32_0 = arith.constant 0 : i32
    %c0_i32_1 = arith.constant 0 : i32
    return %c0_i32, %c0_i32_0 : i32, i32
  }
  func.func @transform_5(%arg0: i32, %arg1: i32, %arg2: memref<1xi32, #tpu.memory_space<smem>>) -> (i32, i32) {
    %c0_i32 = arith.constant 0 : i32
    %c0_i32_0 = arith.constant 0 : i32
    %c0_i32_1 = arith.constant 0 : i32
    return %c0_i32, %c0_i32_0 : i32, i32
  }
  func.func @transform_6(%arg0: i32, %arg1: i32, %arg2: memref<1xi32, #tpu.memory_space<smem>>) -> (i32, i32) {
    %c0_i32 = arith.constant 0 : i32
    %c0_i32_0 = arith.constant 0 : i32
    %c0_i32_1 = arith.constant 0 : i32
    return %c0_i32, %c0_i32_0 : i32, i32
  }
  func.func @transform_7(%arg0: i32, %arg1: i32, %arg2: memref<1xi32, #tpu.memory_space<smem>>) -> (i32, i32) {
    %c0_i32 = arith.constant 0 : i32
    %c0_i32_0 = arith.constant 0 : i32
    %c0_i32_1 = arith.constant 0 : i32
    return %c0_i32, %c0_i32_0 : i32, i32
  }
  func.func @transform_8(%arg0: i32, %arg1: i32, %arg2: memref<1xi32, #tpu.memory_space<smem>>) -> (i32, i32) {
    %c0_i32 = arith.constant 0 : i32
    %c0_i32_0 = arith.constant 0 : i32
    return %arg0, %c0_i32 : i32, i32
  }
}

module attributes {stable_mosaic.version = 11 : i64} {
  func.func @_gsage_packed_kernel(%arg0: i32, %arg1: i32, %arg2: memref<1xi32, #tpu.memory_space<smem>>, %arg3: memref<16x128xbf16, #tpu.memory_space<vmem>>, %arg4: memref<128x128xbf16, #tpu.memory_space<vmem>>, %arg5: memref<16x128xbf16, #tpu.memory_space<vmem>>, %arg6: memref<16x1xf32, #tpu.memory_space<vmem>>, %arg7: memref<128x128xbf16, #tpu.memory_space<vmem>>, %arg8: memref<1x128xf32, #tpu.memory_space<vmem>>, %arg9: memref<1x128xf32, #tpu.memory_space<vmem>>, %arg10: memref<1x128xf32, #tpu.memory_space<vmem>>, %arg11: memref<16x128xbf16, #tpu.memory_space<vmem>>, %arg12: memref<16x128xf32, #tpu.memory_space<vmem>>) attributes {dimension_semantics = [#tpu.dimension_semantics<parallel>, #tpu.dimension_semantics<arbitrary>], iteration_bounds = array<i64: 1, 1>, scalar_prefetch = 1 : i64, scratch_operands = 1 : i64, tpu.core_type = #tpu.core_type<tc>, window_params = [{transform_indices = @transform_0, window_bounds = array<i64: 16, 128>}, {transform_indices = @transform_1, window_bounds = array<i64: 128, 128>}, {transform_indices = @transform_2, window_bounds = array<i64: 16, 128>}, {transform_indices = @transform_3, window_bounds = array<i64: 16, 1>}, {pipeline_mode = #tpu.pipeline_mode<synchronous>, transform_indices = @transform_4, window_bounds = array<i64: 128, 128>}, {pipeline_mode = #tpu.pipeline_mode<synchronous>, transform_indices = @transform_5, window_bounds = array<i64: 1, 128>}, {pipeline_mode = #tpu.pipeline_mode<synchronous>, transform_indices = @transform_6, window_bounds = array<i64: 1, 128>}, {pipeline_mode = #tpu.pipeline_mode<synchronous>, transform_indices = @transform_7, window_bounds = array<i64: 1, 128>}, {transform_indices = @transform_8, window_bounds = array<i64: 16, 128>}]} {
    %c0_i32 = arith.constant 0 : i32
    %0 = arith.cmpi eq, %arg1, %c0_i32 : i32
    %1 = arith.extui %0 : i1 to i32
    %c0_i32_0 = arith.constant 0 : i32
    %2 = arith.cmpi ne, %1, %c0_i32_0 : i32
    scf.if %2 {
      %c0 = arith.constant 0 : index
      %c0_5 = arith.constant 0 : index
      %13 = vector.load %arg5[%c0, %c0_5] : memref<16x128xbf16, #tpu.memory_space<vmem>>, vector<16x128xbf16>
      %14 = arith.extf %13 : vector<16x128xbf16> to vector<16x128xf32>
      %c0_6 = arith.constant 0 : index
      %c0_7 = arith.constant 0 : index
      %15 = vector.load %arg12[%c0_6, %c0_7] : memref<16x128xf32, #tpu.memory_space<vmem>>, vector<16x128xf32>
      tpu.vector_store %arg12[%c0_6, %c0_7], %14 {strides = array<i32>} : memref<16x128xf32, #tpu.memory_space<vmem>>, vector<16x128xf32>,
    } else {
    }
    %c1_i32 = arith.constant 1 : i32
    %3 = arith.muli %arg0, %c1_i32 : i32
    %4 = arith.addi %3, %arg1 : i32
    %5 = arith.index_cast %4 : i32 to index
    %6 = memref.load %arg2[%5] : memref<1xi32, #tpu.memory_space<smem>>
    %c0_i32_1 = arith.constant 0 : i32
    %7 = arith.cmpi ne, %6, %c0_i32_1 : i32
    %8 = arith.extui %7 : i1 to i32
    %c0_i32_2 = arith.constant 0 : i32
    %9 = arith.cmpi ne, %8, %c0_i32_2 : i32
    scf.if %9 {
      %c0 = arith.constant 0 : index
      %c0_5 = arith.constant 0 : index
      %13 = vector.load %arg12[%c0, %c0_5] : memref<16x128xf32, #tpu.memory_space<vmem>>, vector<16x128xf32>
      %c0_6 = arith.constant 0 : index
      %c0_7 = arith.constant 0 : index
      %14 = vector.load %arg3[%c0_6, %c0_7] : memref<16x128xbf16, #tpu.memory_space<vmem>>, vector<16x128xbf16>
      %c0_8 = arith.constant 0 : index
      %c0_9 = arith.constant 0 : index
      %15 = vector.load %arg4[%c0_8, %c0_9] : memref<128x128xbf16, #tpu.memory_space<vmem>>, vector<128x128xbf16>
      %cst = arith.constant dense<0.000000e+00> : vector<16x128xf32>
      %16 = tpu.matmul %14, %15, %cst {dimension_numbers = #tpu.dot_dimension_numbers<[1], [0], [0], [1], [0, 0, 1, 1], [], []>} : vector<16x128xbf16>, vector<128x128xbf16>, vector<16x128xf32> -> vector<16x128xf32>
      %17 = arith.addf %13, %16 : vector<16x128xf32>
      %c0_10 = arith.constant 0 : index
      %c0_11 = arith.constant 0 : index
      %18 = vector.load %arg12[%c0_10, %c0_11] : memref<16x128xf32, #tpu.memory_space<vmem>>, vector<16x128xf32>
      tpu.vector_store %arg12[%c0_10, %c0_11], %17 {strides = array<i32>} : memref<16x128xf32, #tpu.memory_space<vmem>>, vector<16x128xf32>,
    } else {
    }
    %c0_i32_3 = arith.constant 0 : i32
    %10 = arith.cmpi eq, %arg1, %c0_i32_3 : i32
    %11 = arith.extui %10 : i1 to i32
    %c0_i32_4 = arith.constant 0 : i32
    %12 = arith.cmpi ne, %11, %c0_i32_4 : i32
    scf.if %12 {
      %c0 = arith.constant 0 : index
      %c0_5 = arith.constant 0 : index
      %13 = vector.load %arg12[%c0, %c0_5] : memref<16x128xf32, #tpu.memory_space<vmem>>, vector<16x128xf32>
      %14 = tpu.iota {dimensions = array<i32: 1>} : vector<16x128xi32>
      %c32_i32 = arith.constant 32 : i32
      %15 = vector.broadcast %c32_i32 : i32 to vector<16x128xi32>
      %16 = arith.cmpi slt, %14, %15 : vector<16x128xi32>
      %c0_6 = arith.constant 0 : index
      %c0_7 = arith.constant 0 : index
      %17 = vector.load %arg6[%c0_6, %c0_7] : memref<16x1xf32, #tpu.memory_space<vmem>>, vector<16x1xf32>
      %cst = arith.constant 1.000000e+00 : f32
      %18 = vector.shape_cast %17 : vector<16x1xf32> to vector<16x1xf32>
      %19 = vector.broadcast %18 : vector<16x1xf32> to vector<16x128xf32>
      %20 = vector.broadcast %cst : f32 to vector<16x128xf32>
      %21 = arith.select %16, %19, %20 : vector<16x128xi1>, vector<16x128xf32>
      %22 = arith.mulf %13, %21 : vector<16x128xf32>
      %23 = arith.truncf %22 : vector<16x128xf32> to vector<16x128xbf16>
      %c0_8 = arith.constant 0 : index
      %c0_9 = arith.constant 0 : index
      %24 = vector.load %arg7[%c0_8, %c0_9] : memref<128x128xbf16, #tpu.memory_space<vmem>>, vector<128x128xbf16>
      %cst_10 = arith.constant dense<0.000000e+00> : vector<16x128xf32>
      %25 = tpu.matmul %23, %24, %cst_10 {dimension_numbers = #tpu.dot_dimension_numbers<[1], [0], [0], [1], [0, 0, 1, 1], [], []>} : vector<16x128xbf16>, vector<128x128xbf16>, vector<16x128xf32> -> vector<16x128xf32>
      %c0_11 = arith.constant 0 : index
      %c0_12 = arith.constant 0 : index
      %26 = vector.load %arg8[%c0_11, %c0_12] : memref<1x128xf32, #tpu.memory_space<vmem>>, vector<1x128xf32>
      %27 = vector.broadcast %26 : vector<1x128xf32> to vector<16x128xf32>
      %28 = arith.addf %25, %27 : vector<16x128xf32>
      %c0_13 = arith.constant 0 : index
      %c0_14 = arith.constant 0 : index
      %29 = vector.load %arg9[%c0_13, %c0_14] : memref<1x128xf32, #tpu.memory_space<vmem>>, vector<1x128xf32>
      %c0_15 = arith.constant 0 : index
      %c0_16 = arith.constant 0 : index
      %30 = vector.load %arg10[%c0_15, %c0_16] : memref<1x128xf32, #tpu.memory_space<vmem>>, vector<1x128xf32>
      %cst_17 = arith.constant 0.000000e+00 : f32
      %31 = vector.broadcast %cst_17 : f32 to vector<16x128xf32>
      %32 = arith.maximumf %28, %31 : vector<16x128xf32>
      %33 = tpu.iota {dimensions = array<i32: 1>} : vector<16x128xi32>
      %c96_i32 = arith.constant 96 : i32
      %34 = vector.broadcast %c96_i32 : i32 to vector<16x128xi32>
      %35 = arith.cmpi slt, %33, %34 : vector<16x128xi32>
      %36 = arith.extui %35 : vector<16x128xi1> to vector<16x128xi32>
      %37 = arith.sitofp %36 : vector<16x128xi32> to vector<16x128xf32>
      %38 = arith.mulf %32, %37 : vector<16x128xf32>
      %cst_18 = arith.constant dense<0.000000e+00> : vector<16xf32>
      %39 = vector.multi_reduction <add>, %38, %cst_18 [1] : vector<16x128xf32> to vector<16xf32>
      %40 = vector.shape_cast %39 : vector<16xf32> to vector<16x1xf32>
      %cst_19 = arith.constant 0.010416667 : f32
      %41 = vector.broadcast %cst_19 : f32 to vector<16x1xf32>
      %42 = arith.mulf %40, %41 : vector<16x1xf32>
      %43 = vector.broadcast %42 : vector<16x1xf32> to vector<16x128xf32>
      %44 = arith.subf %38, %43 : vector<16x128xf32>
      %45 = arith.mulf %44, %37 : vector<16x128xf32>
      %46 = arith.mulf %45, %45 : vector<16x128xf32>
      %cst_20 = arith.constant dense<0.000000e+00> : vector<16xf32>
      %47 = vector.multi_reduction <add>, %46, %cst_20 [1] : vector<16x128xf32> to vector<16xf32>
      %48 = vector.shape_cast %47 : vector<16xf32> to vector<16x1xf32>
      %cst_21 = arith.constant 0.010416667 : f32
      %49 = vector.broadcast %cst_21 : f32 to vector<16x1xf32>
      %50 = arith.mulf %48, %49 : vector<16x1xf32>
      %cst_22 = arith.constant 9.99999974E-6 : f32
      %51 = vector.broadcast %cst_22 : f32 to vector<16x1xf32>
      %52 = arith.addf %50, %51 : vector<16x1xf32>
      %53 = math.rsqrt %52 : vector<16x1xf32>
      %54 = vector.broadcast %53 : vector<16x1xf32> to vector<16x128xf32>
      %55 = arith.mulf %45, %54 : vector<16x128xf32>
      %56 = vector.broadcast %29 : vector<1x128xf32> to vector<16x128xf32>
      %57 = arith.mulf %55, %56 : vector<16x128xf32>
      %58 = vector.broadcast %30 : vector<1x128xf32> to vector<16x128xf32>
      %59 = arith.addf %57, %58 : vector<16x128xf32>
      %60 = arith.truncf %59 : vector<16x128xf32> to vector<16x128xbf16>
      %c0_23 = arith.constant 0 : index
      %c0_24 = arith.constant 0 : index
      %61 = vector.load %arg11[%c0_23, %c0_24] : memref<16x128xbf16, #tpu.memory_space<vmem>>, vector<16x128xbf16>
      tpu.vector_store %arg11[%c0_23, %c0_24], %60 {strides = array<i32>} : memref<16x128xbf16, #tpu.memory_space<vmem>>, vector<16x128xbf16>,
    } else {
    }
    return
  }
  func.func @transform_0(%arg0: i32, %arg1: i32, %arg2: memref<1xi32, #tpu.memory_space<smem>>) -> (i32, i32) {
    %c0_i32 = arith.constant 0 : i32
    return %arg0, %arg1 : i32, i32
  }
  func.func @transform_1(%arg0: i32, %arg1: i32, %arg2: memref<1xi32, #tpu.memory_space<smem>>) -> (i32, i32) {
    %c0_i32 = arith.constant 0 : i32
    %c0_i32_0 = arith.constant 0 : i32
    return %arg1, %c0_i32 : i32, i32
  }
  func.func @transform_2(%arg0: i32, %arg1: i32, %arg2: memref<1xi32, #tpu.memory_space<smem>>) -> (i32, i32) {
    %c0_i32 = arith.constant 0 : i32
    %c0_i32_0 = arith.constant 0 : i32
    return %arg0, %c0_i32 : i32, i32
  }
  func.func @transform_3(%arg0: i32, %arg1: i32, %arg2: memref<1xi32, #tpu.memory_space<smem>>) -> (i32, i32) {
    %c0_i32 = arith.constant 0 : i32
    %c0_i32_0 = arith.constant 0 : i32
    return %arg0, %c0_i32 : i32, i32
  }
  func.func @transform_4(%arg0: i32, %arg1: i32, %arg2: memref<1xi32, #tpu.memory_space<smem>>) -> (i32, i32) {
    %c0_i32 = arith.constant 0 : i32
    %c0_i32_0 = arith.constant 0 : i32
    %c0_i32_1 = arith.constant 0 : i32
    return %c0_i32, %c0_i32_0 : i32, i32
  }
  func.func @transform_5(%arg0: i32, %arg1: i32, %arg2: memref<1xi32, #tpu.memory_space<smem>>) -> (i32, i32) {
    %c0_i32 = arith.constant 0 : i32
    %c0_i32_0 = arith.constant 0 : i32
    %c0_i32_1 = arith.constant 0 : i32
    return %c0_i32, %c0_i32_0 : i32, i32
  }
  func.func @transform_6(%arg0: i32, %arg1: i32, %arg2: memref<1xi32, #tpu.memory_space<smem>>) -> (i32, i32) {
    %c0_i32 = arith.constant 0 : i32
    %c0_i32_0 = arith.constant 0 : i32
    %c0_i32_1 = arith.constant 0 : i32
    return %c0_i32, %c0_i32_0 : i32, i32
  }
  func.func @transform_7(%arg0: i32, %arg1: i32, %arg2: memref<1xi32, #tpu.memory_space<smem>>) -> (i32, i32) {
    %c0_i32 = arith.constant 0 : i32
    %c0_i32_0 = arith.constant 0 : i32
    %c0_i32_1 = arith.constant 0 : i32
    return %c0_i32, %c0_i32_0 : i32, i32
  }
  func.func @transform_8(%arg0: i32, %arg1: i32, %arg2: memref<1xi32, #tpu.memory_space<smem>>) -> (i32, i32) {
    %c0_i32 = arith.constant 0 : i32
    %c0_i32_0 = arith.constant 0 : i32
    return %arg0, %c0_i32 : i32, i32
  }
}

</mosaic_0001>

<bundles_post_ra>
// kernel: tpu_custom_call.1
= control target key start
LH: loop header
LB: loop body
LE: loop exit
PB: predicated region body
PF: predicated region fallthrough
CT: control target
= control target key end

     0   :  { %15 = vsyncpa [#allocation6], 0  ;;  %s703_s0 = inlined_call_operand.<no memory space> [shape: s32[1], index: 0, kind: input, shape index: {}]   ;;  %s704_s1 = inlined_call_operand.vmem [shape: bf16[16,128], index: 1, kind: input, shape index: {}]   ;;  %s705_s2 = inlined_call_operand.hbm [shape: bf16[128,128], index: 2, kind: input, shape index: {}]   ;;  %s706_s3 = inlined_call_operand.vmem [shape: bf16[16,128], index: 3, kind: input, shape index: {}]   ;;  %s707_s4 = inlined_call_operand.vmem [shape: f32[16,1], index: 4, kind: input, shape index: {}]   ;;  %s708_s5 = inlined_call_operand.hbm [shape: bf16[128,128], index: 5, kind: input, shape index: {}]   ;;  %s709_s6 = inlined_call_operand.vmem [shape: f32[1,128], index: 6, kind: input, shape index: {}]   ;;  %s710_s7 = inlined_call_operand.vmem [shape: f32[1,128], index: 7, kind: input, shape index: {}]   ;;  %s711_s8 = inlined_call_operand.vmem [shape: f32[1,128], index: 8, kind: input, shape index: {}]   ;;  %s712_s9 = inlined_call_operand.hbm [shape: bf16[16,128], index: 9, kind: output, shape index: {}]  }
   0x1   :  { %16 = vsyncpa [#allocation9], 0 }
   0x2   :  { %17 = vsyncpa [#allocation7], 0  ;;  %s601_s30 = smov [#allocation5]  }
   0x3   :  { %s25_s10 = sshll.u32 %s601_s30, 4  ;;  %s26_s10 = int_to_ptr.vmem [resolvable:$true] %s25_s10 }
   0x4   :  { %s543_s11 = scalar_lea.vmem %s26_s10, 1024  ;;  %p548_p1 = scmp.lt.s32.totalorder %s26_s10, %s26_s10 }
   0x5   :  { %p544_p0 = scmp.ne.s32.totalorder %s26_s10, %s543_s11  ;;  %p549_p2 = scmp.lt.s32.totalorder %s543_s11, %s543_s11 }
   0x7   :  { %p550_p3 = por %p549_p2, %p548_p1 }
   0x9   :  { %p551_p4 = pnand %p550_p3, %p544_p0 }
   0xb   :  { %554 = shalt.err (!%p551_p4)
}
   0xc   :  { %s602_s12 = smov 64   ;;  %s603_s13 = smov 4  }
   0xd   :  { %31 = dma.hbm_to_vmem [thread:$0]  %s705_s2, 1024, %s26_s10, [#allocation6], %s602_s12, %s602_s12, %s603_s13  }
   0xe   :  { %s604_s16 = smov [#allocation8]  }
   0xf   :  { %s41_s17 = sshll.u32 %s604_s16, 4  ;;  %s42_s17 = int_to_ptr.vmem [resolvable:$true] %s41_s17 }
  0x10   :  { %s563_s18 = scalar_lea.vmem %s42_s17, 1024  ;;  %p568_p6 = scmp.lt.s32.totalorder %s42_s17, %s42_s17 }
  0x11   :  { %p564_p5 = scmp.ne.s32.totalorder %s42_s17, %s563_s18  ;;  %p569_p7 = scmp.lt.s32.totalorder %s563_s18, %s563_s18 }
  0x13   :  { %p570_p8 = por %p569_p7, %p568_p6 }
  0x15   :  { %p571_p9 = pnand %p570_p8, %p564_p5 }
  0x17   :  { %574 = shalt.err (!%p571_p9)
}
  0x18   :  { %47 = dma.hbm_to_vmem [thread:$0]  %s708_s5, 1024, %s42_s17, [#allocation9], %s602_s12, %s602_s12, %s603_s13  }
  0x19   :  { %595 = dma.done.wait [#allocation6], 1024  }
  0x1a   :  { %596 = vsyncadd [#allocation6], 4294966272 }
  0x1b   :  { %597 = dma.done.wait [#allocation9], 1024  }
  0x1c   :  { %598 = vsyncadd [#allocation9], 4294966272  ;;  %v437_v0 = vld [vmem:[%s706_s3] sm:$0xff]   ;;  %p410_p10 = scmp.eq.s32.totalorder %s703_s0, 0 }
  0x1d   :  { %v438_v1 = vunpack.c.l.bf16 %v437_v0  ;;  %v439_v2 = vunpack.c.h.bf16 %v437_v0 }
  0x1e   :  { %76 = sbr.rel (%p410_p10) target bundleno = 268 (0x10c), region = 49 }
  0x1f   :  { %69 = vst [vmem:[#allocation2] sm:$0xff] %v438_v1  ;;  %70 = vst [vmem:[#allocation2 + $0x8] sm:$0xff] %v439_v2 }
  0x23   :  { %v513_v3 = vld [vmem:[#allocation5 + $0x38] sm:$0xff]   ;;  %v605_v4 = vmov 0.0   ;;  %v514_v5 = vld [vmem:[#allocation5 + $0x30] sm:$0xff]   ;;  %vm606_vm0 = vmmov 0   ;;  %v515_v6 = vld [vmem:[#allocation5 + $0x28] sm:$0xff]  }
  0x24   :  { %463 = vmatprep.subr.bf16.mxu0 %v605_v4  ;;  %479 = vmatprep.mubr.msk.bf16.mxu0 %vm606_vm0, %v605_v4  ;;  %v516_v7 = vld [vmem:[#allocation5 + $0x20] sm:$0xff]   ;;  %v517_v8 = vld [vmem:[#allocation5 + $0x18] sm:$0xff]   ;;  %v518_v9 = vld [vmem:[#allocation5 + $0x10] sm:$0xff]  }
  0x25   :  { %464 = vmatpush3.bf16.msra.mxu0 %v513_v3  ;;  %v519_v10 = vld [vmem:[#allocation5 + $0x8] sm:$0xff]   ;;  %v520_v11 = vld [vmem:[#allocation5] sm:$0xff]   ;;  %v521_v12 = vld [vmem:[%s704_s1] sm:$0xff]  }
  0x26   :  { %465 = vmatprep.subr.bf16.mxu0 %v605_v4  ;;  %v77_v13 = vld [vmem:[#allocation2] sm:$0xff]  ;;  %v78_v17 = vld [vmem:[#allocation2 + $0x8] sm:$0xff] }
  0x29   :  { %466 = vmatpush3.bf16.msra.mxu0 %v514_v5 }
  0x2a   :  { %467 = vmatprep.subr.bf16.mxu0 %v605_v4 }
  0x2d   :  { %468 = vmatpush3.bf16.msra.mxu0 %v515_v6 }
  0x2e   :  { %469 = vmatprep.subr.bf16.mxu0 %v605_v4 }
  0x31   :  { %470 = vmatpush3.bf16.msra.mxu0 %v516_v7 }
  0x32   :  { %471 = vmatprep.subr.bf16.mxu0 %v605_v4 }
  0x35   :  { %472 = vmatpush3.bf16.msra.mxu0 %v517_v8 }
  0x36   :  { %473 = vmatprep.subr.bf16.mxu0 %v605_v4 }
  0x39   :  { %474 = vmatpush3.bf16.msra.mxu0 %v518_v9 }
  0x3a   :  { %475 = vmatprep.subr.bf16.mxu0 %v605_v4 }
  0x3d   :  { %476 = vmatpush3.bf16.msra.mxu0 %v519_v10 }
  0x3e   :  { %477 = vmatprep.subr.bf16.mxu0 %v605_v4 }
  0x41   :  { %478 = vmatpush3.bf16.msra.mxu0 %v520_v11 }
  0x44   :  { %480 = vmatmul.mubr.bf16.vlgmr.msra.gmra.mxu0 %v521_v12 }
 0x104   :  { %v185_v14 = vpop.f32.mrf.mxu0 }
 0x105   :  { %v192_v15 = vadd.f32 %v185_v14, %v77_v13 }
 0x106   :  { %v481_v16 = vpop.f32.mrf.mxu0 }
 0x107   :  { %194 = vst [vmem:[#allocation2] sm:$0xff] %v192_v15 }
 0x108   :  { %v188_v18 = vpop.f32.mrf.mxu0 }
 0x109   :  { %v193_v19 = vadd.f32 %v188_v18, %v78_v17 }
 0x10a   :  { %v482_v20 = vpop.f32.mrf.mxu0 }
 0x10b   :  { %195 = vst [vmem:[#allocation2 + $0x8] sm:$0xff] %v193_v19 }
 0x10c PF:  { %v204_v21 = vld [vmem:[%s707_s4] sm:$0xff]  ;;  %v607_v22 = vmov 0   ;;  %v608_v23 = vmov 0.0   ;;  %v523_v24 = vld [vmem:[#allocation8 + $0x38] sm:$0xff]   ;;  %v525_v27 = vld [vmem:[#allocation8 + $0x28] sm:$0xff]   ;;  %vm609_vm1 = vmmov 0   ;;  %v201_v33 = vlaneseq }
 0x10d   :  { %522 = vset.pattern.permute.xlu0 %v607_v22  ;;  %483 = vmatprep.subr.bf16.mxu0 %v608_v23  ;;  %v205_v25 = vld [vmem:[%s707_s4 + $0x8] sm:$0xff]  ;;  %v524_v26 = vld [vmem:[#allocation8 + $0x30] sm:$0xff]   ;;  %v526_v28 = vld [vmem:[#allocation8 + $0x20] sm:$0xff]   ;;  %s610_s30 = smov [#allocation10]  }
 0x10e   :  { %208 = vperm.xlu0 %522, %v204_v21   ;;  %484 = vmatpush3.bf16.msra.mxu0 %v523_v24  ;;  %v527_v29 = vld [vmem:[#allocation8 + $0x18] sm:$0xff]   ;;  %v528_v30 = vld [vmem:[#allocation8 + $0x10] sm:$0xff]   ;;  %v529_v31 = vld [vmem:[#allocation8 + $0x8] sm:$0xff]   ;;  %v202_v34 = vand.u32 127, %v201_v33  ;;  %s397_s10 = sshll.u32 %s610_s30, 4  ;;  %s398_s10 = int_to_ptr.vmem [resolvable:$true] %s397_s10 }
 0x10f   :  { %485 = vmatprep.subr.bf16.mxu0 %v608_v23  ;;  %499 = vmatprep.mubr.msk.bf16.mxu0 %vm609_vm1, %v608_v23  ;;  %v530_v32 = vld [vmem:[#allocation8] sm:$0xff]   ;;  %v199_v36 = vld [vmem:[#allocation2] sm:$0xff]  ;;  %s575_s11 = scalar_lea.vmem %s398_s10, 128  ;;  %p580_p12 = scmp.lt.s32.totalorder %s398_s10, %s398_s10 }
 0x110   :  { %vm203_vm2 = vcmp.lt.s32.totalorder %v202_v34, 32  ;;  %v420_v44 = vld [vmem:[%s709_s6] ss:$0 sm:$0xff]  ;;  %vm337_vm3 = vcmp.lt.s32.totalorder %v202_v34, 96  ;;  %p576_p11 = scmp.ne.s32.totalorder %s398_s10, %s575_s11  ;;  %p581_p13 = scmp.lt.s32.totalorder %s575_s11, %s575_s11 }
 0x111   :  { %v429_v48 = vsel %vm337_vm3, 1.0, %v608_v23  ;;  %v430_v10 = vld [vmem:[%s710_s7] ss:$0 sm:$0xff] }
 0x112   :  { %213 = vperm.xlu0 %522, %v205_v25   ;;  %486 = vmatpush3.bf16.msra.mxu0 %v524_v26  ;;  %v200_v38 = vld [vmem:[#allocation2 + $0x8] sm:$0xff]  ;;  %v431_v14 = vld [vmem:[%s711_s8] ss:$0 sm:$0xff]  ;;  %p582_p0 = por %p581_p13, %p580_p12 }
 0x113   :  { %487 = vmatprep.subr.bf16.mxu0 %v608_v23 }
 0x114   :  { %p583_p1 = pnand %p582_p0, %p576_p11 }
 0x116   :  { %488 = vmatpush3.bf16.msra.mxu0 %v525_v27 }
 0x117   :  { %489 = vmatprep.subr.bf16.mxu0 %v608_v23 }
 0x11a   :  { %490 = vmatpush3.bf16.msra.mxu0 %v526_v28 }
 0x11b   :  { %491 = vmatprep.subr.bf16.mxu0 %v608_v23 }
 0x11e   :  { %492 = vmatpush3.bf16.msra.mxu0 %v527_v29 }
 0x11f   :  { %493 = vmatprep.subr.bf16.mxu0 %v608_v23 }
 0x122   :  { %494 = vmatpush3.bf16.msra.mxu0 %v528_v30 }
 0x123   :  { %495 = vmatprep.subr.bf16.mxu0 %v608_v23 }
 0x126   :  { %496 = vmatpush3.bf16.msra.mxu0 %v529_v31 }
 0x127   :  { %497 = vmatprep.subr.bf16.mxu0 %v608_v23 }
 0x12a   :  { %498 = vmatpush3.bf16.msra.mxu0 %v530_v32 }
 0x189   :  { %v209_v35 = vpop.permute.xlu0 %208 }
 0x18a   :  { %v216_v37 = vsel %vm203_vm2, %v209_v35, 1.0 }
 0x18b   :  { %v218_v41 = vmul.f32 %v216_v37, %v199_v36 }
 0x18d   :  { %v214_v39 = vpop.permute.xlu0 %213 }
 0x18e   :  { %v217_v40 = vsel %vm203_vm2, %v214_v39, 1.0 }
 0x18f   :  { %v219_v42 = vmul.f32 %v217_v40, %v200_v38 }
 0x191   :  { %v220_v43 = vpack.c.bf16 %v219_v42, %v218_v41 }
 0x193   :  { %500 = vmatmul.mubr.bf16.vlgmr.msra.gmra.mxu0 %v220_v43 }
 0x253   :  { %v326_v45 = vpop.f32.mrf.mxu0 }
 0x254   :  { %v327_v46 = vadd.f32 %v420_v44, %v326_v45 }
 0x255   :  { %v501_v47 = vpop.f32.mrf.mxu0 }
 0x256   :  { %v335_v49 = vmax.f32 %v327_v46, 0.0 }
 0x257   :  { %v329_v50 = vpop.f32.mrf.mxu0 }
 0x258   :  { %v330_v51 = vadd.f32 %v420_v44, %v329_v50  ;;  %v340_v52 = vmul.f32 %v429_v48, %v335_v49 }
 0x259   :  { %v502_v53 = vpop.f32.mrf.mxu0 }
 0x25a   :  { %v336_v54 = vmax.f32 %v330_v51, 0.0  ;;  %342 = vadd.xlane.f32.xlu1 %v340_v52 }
 0x25c   :  { %v341_v55 = vmul.f32 %v429_v48, %v336_v54 }
 0x25e   :  { %344 = vadd.xlane.f32.xlu1 %v341_v55 }
 0x2e3   :  { %v343_v56 = vpop.xlane.xlu1 %342 }
 0x2e4   :  { %v346_v57 = vmul.f32 0.010416667, %v343_v56 }
 0x2e6   :  { %v348_v58 = vsub.f32 %v340_v52, %v346_v57 }
 0x2e7   :  { %v345_v59 = vpop.xlane.xlu1 %344 }
 0x2e8   :  { %v347_v60 = vmul.f32 0.010416667, %v345_v59  ;;  %v350_v61 = vmul.f32 %v429_v48, %v348_v58 }
 0x2ea   :  { %v349_v62 = vsub.f32 %v341_v55, %v347_v60  ;;  %v352_v63 = vmul.f32 %v350_v61, %v350_v61 }
 0x2ec   :  { %354 = vadd.xlane.f32.xlu0 %v352_v63  ;;  %v351_v0 = vmul.f32 %v429_v48, %v349_v62 }
 0x2ee   :  { %v353_v1 = vmul.f32 %v351_v0, %v351_v0 }
 0x2f0   :  { %356 = vadd.xlane.f32.xlu1 %v353_v1 }
 0x375   :  { %v355_v2 = vpop.xlane.xlu0 %354 }
 0x376   :  { %v358_v3 = vmul.f32 0.010416667, %v355_v2 }
 0x378   :  { %v360_v4 = vadd.f32 1e-05, %v358_v3 }
 0x379   :  { %v357_v5 = vpop.xlane.xlu1 %356 }
 0x37a   :  { %531 = vrsqrt.f32 %v360_v4  ;;  %v359_v6 = vmul.f32 0.010416667, %v357_v5 }
 0x37c   :  { %v361_v7 = vadd.f32 1e-05, %v359_v6 }
 0x37e   :  { %533 = vrsqrt.f32 %v361_v7 }
 0x387   :  { %v532_v8 = vpop.eup %531 }
 0x388   :  { %v364_v9 = vmul.f32 %v532_v8, %v350_v61 }
 0x38a   :  { %v372_v13 = vmul.f32 %v430_v10, %v364_v9 }
 0x38b   :  { %v534_v11 = vpop.eup %533 }
 0x38c   :  { %v365_v12 = vmul.f32 %v534_v11, %v351_v0  ;;  %v380_v16 = vadd.f32 %v431_v14, %v372_v13 }
 0x38e   :  { %v373_v15 = vmul.f32 %v430_v10, %v365_v12 }
 0x390   :  { %v381_v17 = vadd.f32 %v431_v14, %v373_v15 }
 0x392   :  { %v443_v18 = vpack.c.bf16 %v381_v17, %v380_v16 }
 0x394   :  { %444 = vst [vmem:[#allocation10] sm:$0xff] %v443_v18  }
 0x395   :  { %586 = shalt.err (!%p583_p1)
}
 0x396   :  { %403 = dma.vmem_to_hbm [thread:$0]  %s398_s10, 128, %s712_s9, [#allocation7], %s602_s12, %s602_s12, %s603_s13  }
 0x397   :  { %599 = dma.done.wait [#allocation7], 128  }
 0x398   :  { %600 = vsyncadd [#allocation7], 4294967168 }
 0x399   :  { %407 = vsyncpa [#allocation6], 1 }
 0x39a   :  { %408 = vsyncpa [#allocation9], 1 }
 0x39b   :  { %409 = vsyncpa [#allocation7], 1 }

// kernel: tpu_custom_call.1
= control target key start
LH: loop header
LB: loop body
LE: loop exit
PB: predicated region body
PF: predicated region fallthrough
CT: control target
= control target key end

     0   :  { %15 = vsyncpa [#allocation6], 0  ;;  %s703_s0 = inlined_call_operand.<no memory space> [shape: s32[1], index: 0, kind: input, shape index: {}]   ;;  %s704_s1 = inlined_call_operand.vmem [shape: bf16[16,128], index: 1, kind: input, shape index: {}]   ;;  %s705_s2 = inlined_call_operand.hbm [shape: bf16[128,128], index: 2, kind: input, shape index: {}]   ;;  %s706_s3 = inlined_call_operand.vmem [shape: bf16[16,128], index: 3, kind: input, shape index: {}]   ;;  %s707_s4 = inlined_call_operand.vmem [shape: f32[16,1], index: 4, kind: input, shape index: {}]   ;;  %s708_s5 = inlined_call_operand.hbm [shape: bf16[128,128], index: 5, kind: input, shape index: {}]   ;;  %s709_s6 = inlined_call_operand.vmem [shape: f32[1,128], index: 6, kind: input, shape index: {}]   ;;  %s710_s7 = inlined_call_operand.vmem [shape: f32[1,128], index: 7, kind: input, shape index: {}]   ;;  %s711_s8 = inlined_call_operand.vmem [shape: f32[1,128], index: 8, kind: input, shape index: {}]   ;;  %s712_s9 = inlined_call_operand.hbm [shape: bf16[16,128], index: 9, kind: output, shape index: {}]  }
   0x1   :  { %16 = vsyncpa [#allocation9], 0 }
   0x2   :  { %17 = vsyncpa [#allocation7], 0  ;;  %s601_s30 = smov [#allocation5]  }
   0x3   :  { %s25_s10 = sshll.u32 %s601_s30, 4  ;;  %s26_s10 = int_to_ptr.vmem [resolvable:$true] %s25_s10 }
   0x4   :  { %s543_s11 = scalar_lea.vmem %s26_s10, 1024  ;;  %p548_p1 = scmp.lt.s32.totalorder %s26_s10, %s26_s10 }
   0x5   :  { %p544_p0 = scmp.ne.s32.totalorder %s26_s10, %s543_s11  ;;  %p549_p2 = scmp.lt.s32.totalorder %s543_s11, %s543_s11 }
   0x7   :  { %p550_p3 = por %p549_p2, %p548_p1 }
   0x9   :  { %p551_p4 = pnand %p550_p3, %p544_p0 }
   0xb   :  { %554 = shalt.err (!%p551_p4)
}
   0xc   :  { %s602_s12 = smov 64   ;;  %s603_s13 = smov 4  }
   0xd   :  { %31 = dma.hbm_to_vmem [thread:$0]  %s705_s2, 1024, %s26_s10, [#allocation6], %s602_s12, %s602_s12, %s603_s13  }
   0xe   :  { %s604_s16 = smov [#allocation8]  }
   0xf   :  { %s41_s17 = sshll.u32 %s604_s16, 4  ;;  %s42_s17 = int_to_ptr.vmem [resolvable:$true] %s41_s17 }
  0x10   :  { %s563_s18 = scalar_lea.vmem %s42_s17, 1024  ;;  %p568_p6 = scmp.lt.s32.totalorder %s42_s17, %s42_s17 }
  0x11   :  { %p564_p5 = scmp.ne.s32.totalorder %s42_s17, %s563_s18  ;;  %p569_p7 = scmp.lt.s32.totalorder %s563_s18, %s563_s18 }
  0x13   :  { %p570_p8 = por %p569_p7, %p568_p6 }
  0x15   :  { %p571_p9 = pnand %p570_p8, %p564_p5 }
  0x17   :  { %574 = shalt.err (!%p571_p9)
}
  0x18   :  { %47 = dma.hbm_to_vmem [thread:$0]  %s708_s5, 1024, %s42_s17, [#allocation9], %s602_s12, %s602_s12, %s603_s13  }
  0x19   :  { %595 = dma.done.wait [#allocation6], 1024  }
  0x1a   :  { %596 = vsyncadd [#allocation6], 4294966272 }
  0x1b   :  { %597 = dma.done.wait [#allocation9], 1024  }
  0x1c   :  { %598 = vsyncadd [#allocation9], 4294966272  ;;  %v437_v0 = vld [vmem:[%s706_s3] sm:$0xff]   ;;  %p410_p10 = scmp.eq.s32.totalorder %s703_s0, 0 }
  0x1d   :  { %v438_v1 = vunpack.c.l.bf16 %v437_v0  ;;  %v439_v2 = vunpack.c.h.bf16 %v437_v0 }
  0x1e   :  { %76 = sbr.rel (%p410_p10) target bundleno = 268 (0x10c), region = 49 }
  0x1f   :  { %69 = vst [vmem:[#allocation2] sm:$0xff] %v438_v1  ;;  %70 = vst [vmem:[#allocation2 + $0x8] sm:$0xff] %v439_v2 }
  0x23   :  { %v513_v3 = vld [vmem:[#allocation5 + $0x38] sm:$0xff]   ;;  %v605_v4 = vmov 0.0   ;;  %v514_v5 = vld [vmem:[#allocation5 + $0x30] sm:$0xff]   ;;  %vm606_vm0 = vmmov 0   ;;  %v515_v6 = vld [vmem:[#allocation5 + $0x28] sm:$0xff]  }
  0x24   :  { %463 = vmatprep.subr.bf16.mxu0 %v605_v4  ;;  %479 = vmatprep.mubr.msk.bf16.mxu0 %vm606_vm0, %v605_v4  ;;  %v516_v7 = vld [vmem:[#allocation5 + $0x20] sm:$0xff]   ;;  %v517_v8 = vld [vmem:[#allocation5 + $0x18] sm:$0xff]   ;;  %v518_v9 = vld [vmem:[#allocation5 + $0x10] sm:$0xff]  }
  0x25   :  { %464 = vmatpush3.bf16.msra.mxu0 %v513_v3  ;;  %v519_v10 = vld [vmem:[#allocation5 + $0x8] sm:$0xff]   ;;  %v520_v11 = vld [vmem:[#allocation5] sm:$0xff]   ;;  %v521_v12 = vld [vmem:[%s704_s1] sm:$0xff]  }
  0x26   :  { %465 = vmatprep.subr.bf16.mxu0 %v605_v4  ;;  %v77_v13 = vld [vmem:[#allocation2] sm:$0xff]  ;;  %v78_v17 = vld [vmem:[#allocation2 + $0x8] sm:$0xff] }
  0x29   :  { %466 = vmatpush3.bf16.msra.mxu0 %v514_v5 }
  0x2a   :  { %467 = vmatprep.subr.bf16.mxu0 %v605_v4 }
  0x2d   :  { %468 = vmatpush3.bf16.msra.mxu0 %v515_v6 }
  0x2e   :  { %469 = vmatprep.subr.bf16.mxu0 %v605_v4 }
  0x31   :  { %470 = vmatpush3.bf16.msra.mxu0 %v516_v7 }
  0x32   :  { %471 = vmatprep.subr.bf16.mxu0 %v605_v4 }
  0x35   :  { %472 = vmatpush3.bf16.msra.mxu0 %v517_v8 }
  0x36   :  { %473 = vmatprep.subr.bf16.mxu0 %v605_v4 }
  0x39   :  { %474 = vmatpush3.bf16.msra.mxu0 %v518_v9 }
  0x3a   :  { %475 = vmatprep.subr.bf16.mxu0 %v605_v4 }
  0x3d   :  { %476 = vmatpush3.bf16.msra.mxu0 %v519_v10 }
  0x3e   :  { %477 = vmatprep.subr.bf16.mxu0 %v605_v4 }
  0x41   :  { %478 = vmatpush3.bf16.msra.mxu0 %v520_v11 }
  0x44   :  { %480 = vmatmul.mubr.bf16.vlgmr.msra.gmra.mxu0 %v521_v12 }
 0x104   :  { %v185_v14 = vpop.f32.mrf.mxu0 }
 0x105   :  { %v192_v15 = vadd.f32 %v185_v14, %v77_v13 }
 0x106   :  { %v481_v16 = vpop.f32.mrf.mxu0 }
 0x107   :  { %194 = vst [vmem:[#allocation2] sm:$0xff] %v192_v15 }
 0x108   :  { %v188_v18 = vpop.f32.mrf.mxu0 }
 0x109   :  { %v193_v19 = vadd.f32 %v188_v18, %v78_v17 }
 0x10a   :  { %v482_v20 = vpop.f32.mrf.mxu0 }
 0x10b   :  { %195 = vst [vmem:[#allocation2 + $0x8] sm:$0xff] %v193_v19 }
 0x10c PF:  { %v204_v21 = vld [vmem:[%s707_s4] sm:$0xff]  ;;  %v607_v22 = vmov 0   ;;  %v608_v23 = vmov 0.0   ;;  %v523_v24 = vld [vmem:[#allocation8 + $0x38] sm:$0xff]   ;;  %v525_v27 = vld [vmem:[#allocation8 + $0x28] sm:$0xff]   ;;  %vm609_vm1 = vmmov 0   ;;  %v201_v33 = vlaneseq }
 0x10d   :  { %522 = vset.pattern.permute.xlu0 %v607_v22  ;;  %483 = vmatprep.subr.bf16.mxu0 %v608_v23  ;;  %v205_v25 = vld [vmem:[%s707_s4 + $0x8] sm:$0xff]  ;;  %v524_v26 = vld [vmem:[#allocation8 + $0x30] sm:$0xff]   ;;  %v526_v28 = vld [vmem:[#allocation8 + $0x20] sm:$0xff]   ;;  %s610_s30 = smov [#allocation10]  }
 0x10e   :  { %208 = vperm.xlu0 %522, %v204_v21   ;;  %484 = vmatpush3.bf16.msra.mxu0 %v523_v24  ;;  %v527_v29 = vld [vmem:[#allocation8 + $0x18] sm:$0xff]   ;;  %v528_v30 = vld [vmem:[#allocation8 + $0x10] sm:$0xff]   ;;  %v529_v31 = vld [vmem:[#allocation8 + $0x8] sm:$0xff]   ;;  %v202_v34 = vand.u32 127, %v201_v33  ;;  %s397_s10 = sshll.u32 %s610_s30, 4  ;;  %s398_s10 = int_to_ptr.vmem [resolvable:$true] %s397_s10 }
 0x10f   :  { %485 = vmatprep.subr.bf16.mxu0 %v608_v23  ;;  %499 = vmatprep.mubr.msk.bf16.mxu0 %vm609_vm1, %v608_v23  ;;  %v530_v32 = vld [vmem:[#allocation8] sm:$0xff]   ;;  %v199_v36 = vld [vmem:[#allocation2] sm:$0xff]  ;;  %s575_s11 = scalar_lea.vmem %s398_s10, 128  ;;  %p580_p12 = scmp.lt.s32.totalorder %s398_s10, %s398_s10 }
 0x110   :  { %vm203_vm2 = vcmp.lt.s32.totalorder %v202_v34, 32  ;;  %v420_v44 = vld [vmem:[%s709_s6] ss:$0 sm:$0xff]  ;;  %vm337_vm3 = vcmp.lt.s32.totalorder %v202_v34, 96  ;;  %p576_p11 = scmp.ne.s32.totalorder %s398_s10, %s575_s11  ;;  %p581_p13 = scmp.lt.s32.totalorder %s575_s11, %s575_s11 }
 0x111   :  { %v429_v48 = vsel %vm337_vm3, 1.0, %v608_v23  ;;  %v430_v10 = vld [vmem:[%s710_s7] ss:$0 sm:$0xff] }
 0x112   :  { %213 = vperm.xlu0 %522, %v205_v25   ;;  %486 = vmatpush3.bf16.msra.mxu0 %v524_v26  ;;  %v200_v38 = vld [vmem:[#allocation2 + $0x8] sm:$0xff]  ;;  %v431_v14 = vld [vmem:[%s711_s8] ss:$0 sm:$0xff]  ;;  %p582_p0 = por %p581_p13, %p580_p12 }
 0x113   :  { %487 = vmatprep.subr.bf16.mxu0 %v608_v23 }
 0x114   :  { %p583_p1 = pnand %p582_p0, %p576_p11 }
 0x116   :  { %488 = vmatpush3.bf16.msra.mxu0 %v525_v27 }
 0x117   :  { %489 = vmatprep.subr.bf16.mxu0 %v608_v23 }
 0x11a   :  { %490 = vmatpush3.bf16.msra.mxu0 %v526_v28 }
 0x11b   :  { %491 = vmatprep.subr.bf16.mxu0 %v608_v23 }
 0x11e   :  { %492 = vmatpush3.bf16.msra.mxu0 %v527_v29 }
 0x11f   :  { %493 = vmatprep.subr.bf16.mxu0 %v608_v23 }
 0x122   :  { %494 = vmatpush3.bf16.msra.mxu0 %v528_v30 }
 0x123   :  { %495 = vmatprep.subr.bf16.mxu0 %v608_v23 }
 0x126   :  { %496 = vmatpush3.bf16.msra.mxu0 %v529_v31 }
 0x127   :  { %497 = vmatprep.subr.bf16.mxu0 %v608_v23 }
 0x12a   :  { %498 = vmatpush3.bf16.msra.mxu0 %v530_v32 }
 0x189   :  { %v209_v35 = vpop.permute.xlu0 %208 }
 0x18a   :  { %v216_v37 = vsel %vm203_vm2, %v209_v35, 1.0 }
 0x18b   :  { %v218_v41 = vmul.f32 %v216_v37, %v199_v36 }
 0x18d   :  { %v214_v39 = vpop.permute.xlu0 %213 }
 0x18e   :  { %v217_v40 = vsel %vm203_vm2, %v214_v39, 1.0 }
 0x18f   :  { %v219_v42 = vmul.f32 %v217_v40, %v200_v38 }
 0x191   :  { %v220_v43 = vpack.c.bf16 %v219_v42, %v218_v41 }
 0x193   :  { %500 = vmatmul.mubr.bf16.vlgmr.msra.gmra.mxu0 %v220_v43 }
 0x253   :  { %v326_v45 = vpop.f32.mrf.mxu0 }
 0x254   :  { %v327_v46 = vadd.f32 %v420_v44, %v326_v45 }
 0x255   :  { %v501_v47 = vpop.f32.mrf.mxu0 }
 0x256   :  { %v335_v49 = vmax.f32 %v327_v46, 0.0 }
 0x257   :  { %v329_v50 = vpop.f32.mrf.mxu0 }
 0x258   :  { %v330_v51 = vadd.f32 %v420_v44, %v329_v50  ;;  %v340_v52 = vmul.f32 %v429_v48, %v335_v49 }
 0x259   :  { %v502_v53 = vpop.f32.mrf.mxu0 }
 0x25a   :  { %v336_v54 = vmax.f32 %v330_v51, 0.0  ;;  %342 = vadd.xlane.f32.xlu1 %v340_v52 }
 0x25c   :  { %v341_v55 = vmul.f32 %v429_v48, %v336_v54 }
 0x25e   :  { %344 = vadd.xlane.f32.xlu1 %v341_v55 }
 0x2e3   :  { %v343_v56 = vpop.xlane.xlu1 %342 }
 0x2e4   :  { %v346_v57 = vmul.f32 0.010416667, %v343_v56 }
 0x2e6   :  { %v348_v58 = vsub.f32 %v340_v52, %v346_v57 }
 0x2e7   :  { %v345_v59 = vpop.xlane.xlu1 %344 }
 0x2e8   :  { %v347_v60 = vmul.f32 0.010416667, %v345_v59  ;;  %v350_v61 = vmul.f32 %v429_v48, %v348_v58 }
 0x2ea   :  { %v349_v62 = vsub.f32 %v341_v55, %v347_v60  ;;  %v352_v63 = vmul.f32 %v350_v61, %v350_v61 }
 0x2ec   :  { %354 = vadd.xlane.f32.xlu0 %v352_v63  ;;  %v351_v0 = vmul.f32 %v429_v48, %v349_v62 }
 0x2ee   :  { %v353_v1 = vmul.f32 %v351_v0, %v351_v0 }
 0x2f0   :  { %356 = vadd.xlane.f32.xlu1 %v353_v1 }
 0x375   :  { %v355_v2 = vpop.xlane.xlu0 %354 }
 0x376   :  { %v358_v3 = vmul.f32 0.010416667, %v355_v2 }
 0x378   :  { %v360_v4 = vadd.f32 1e-05, %v358_v3 }
 0x379   :  { %v357_v5 = vpop.xlane.xlu1 %356 }
 0x37a   :  { %531 = vrsqrt.f32 %v360_v4  ;;  %v359_v6 = vmul.f32 0.010416667, %v357_v5 }
 0x37c   :  { %v361_v7 = vadd.f32 1e-05, %v359_v6 }
 0x37e   :  { %533 = vrsqrt.f32 %v361_v7 }
 0x387   :  { %v532_v8 = vpop.eup %531 }
 0x388   :  { %v364_v9 = vmul.f32 %v532_v8, %v350_v61 }
 0x38a   :  { %v372_v13 = vmul.f32 %v430_v10, %v364_v9 }
 0x38b   :  { %v534_v11 = vpop.eup %533 }
 0x38c   :  { %v365_v12 = vmul.f32 %v534_v11, %v351_v0  ;;  %v380_v16 = vadd.f32 %v431_v14, %v372_v13 }
 0x38e   :  { %v373_v15 = vmul.f32 %v430_v10, %v365_v12 }
 0x390   :  { %v381_v17 = vadd.f32 %v431_v14, %v373_v15 }
 0x392   :  { %v443_v18 = vpack.c.bf16 %v381_v17, %v380_v16 }
 0x394   :  { %444 = vst [vmem:[#allocation10] sm:$0xff] %v443_v18  }
 0x395   :  { %586 = shalt.err (!%p583_p1)
}
 0x396   :  { %403 = dma.vmem_to_hbm [thread:$0]  %s398_s10, 128, %s712_s9, [#allocation7], %s602_s12, %s602_s12, %s603_s13  }
 0x397   :  { %599 = dma.done.wait [#allocation7], 128  }
 0x398   :  { %600 = vsyncadd [#allocation7], 4294967168 }
 0x399   :  { %407 = vsyncpa [#allocation6], 1 }
 0x39a   :  { %408 = vsyncpa [#allocation9], 1 }
 0x39b   :  { %409 = vsyncpa [#allocation7], 1 }

</bundles_post_ra>
